<compile_context>
chip_gen: v5e
topology: v5e:2x2
jax: 0.10.0
libtpu: 0.0.40
codegen_flags: <defaults>
</compile_context>

<pallas_src>
import functools

import jax
import jax.numpy as jnp
from jax.experimental import pallas as pl
from jax.experimental.pallas import tpu as pltpu


def _round_up(x, m):
    return ((x + m - 1) // m) * m


def _num_tensorcores():
    """Heuristic: 2 TensorCores on v7x / v4 / v5p, 1 on v5e / v6e."""
    try:
        kind = jax.devices()[0].device_kind.lower()
    except Exception:
        return 1
    if "lite" in kind or "v5e" in kind or "v6" in kind or "v2" in kind or "v3" in kind:
        return 1
    if "v4" in kind or "v5" in kind or "v7" in kind:
        return 2
    return 1


def _pick_row_tile(rows):
    """Largest tile that divides rows (no padding, no gx slice), is a multiple
    of 16 (bf16 output sublane packing), <= 512, and leaves >= 2 grid steps
    when rows allow it (megacore / DMA-compute overlap).  Falls back to a
    single full block."""
    cands = [tr for tr in range(16, min(rows // 2, 512) + 1, 16) if rows % tr == 0]
    return max(cands) if cands else rows


def _pick_batch_tile(B, L, H3p, Hp, Vp):
    """Largest MXU-friendly batch tile whose kernel-2 VMEM footprint fits an
    explicit budget; prefers >= num_tensorcores grid steps on 2-TC chips when
    that keeps the tile >= 64 rows, otherwise maximal tiles (v5e/v6e)."""
    budget = 40 * 1024 * 1024                         # headroom under v7x 64 MiB

    def footprint(tb):
        gx = 2 * L * tb * H3p * 2                     # double-buffered bf16 gx block
        wts = 2 * (Hp * H3p + Hp * Vp) * 2            # double-buffered bf16 weights
        out = 2 * tb * Vp * 4                         # double-buffered f32 output
        live = 12 * tb * Hp * 4 + 4 * tb * H3p * 4    # f32 temporaries in the loop
        return gx + wts + out + live

    cands = [tb for tb in range(16, min(B, 512) + 1, 16) if B % tb == 0]
    if B <= 512:
        cands.append(B)
    cands = sorted(set(cands))
    fitting = [tb for tb in cands if footprint(tb) <= budget]
    if not fitting:
        # TODO(synk): time-chunked gx streaming (manual DMA) when nothing fits.
        return cands[0]
    n_tc = _num_tensorcores()
    split = [tb for tb in fitting if B // tb >= n_tc and tb >= 64]
    return max(split) if split else max(fitting)


# ----------------------------------------------------------------------------
# Kernel 1: fused   PReLU(emb) @ W1 + b1 -> PReLU -> @ W_ih + (b_ih + b_hr,z fold)
#   emb rows are ordered time-major, so the (rows, 3Hp) bf16 output is already
#   the row-major image of (L, B, 3Hp) that the GRU kernel consumes.
# ----------------------------------------------------------------------------
def proj_kernel(a1_ref, a2_ref, emb_ref, w1_ref, b1_ref, wih_ref, bih_ref, gx_ref):
    a1 = a1_ref[0]                                   # SMEM scalar
    a2 = a2_ref[0]
    e = emb_ref[...]                                 # (TR, E) f32
    e = jnp.where(e >= 0, e, a1 * e)                 # PReLU #1 (f32)
    x = jnp.dot(e.astype(jnp.bfloat16), w1_ref[...],
                preferred_element_type=jnp.float32) + b1_ref[...]
    x = jnp.where(x >= 0, x, a2 * x)                 # PReLU #2 (f32)
    gx = jnp.dot(x.astype(jnp.bfloat16), wih_ref[...],
                 preferred_element_type=jnp.float32) + bih_ref[...]
    gx_ref[...] = gx.astype(jnp.bfloat16)            # bf16 HBM write (half traffic)


def input_projection(emb, a1, a2, w1_t, b1, wih_t, bih, TR):
    rows, E = emb.shape
    Hp = w1_t.shape[1]
    H3p = wih_t.shape[1]
    return pl.pallas_call(
        proj_kernel,
        out_shape=jax.ShapeDtypeStruct((rows, H3p), jnp.bfloat16),
        grid=(rows // TR,),
        in_specs=[
            pl.BlockSpec(memory_space=pltpu.MemorySpace.SMEM),   # a1
            pl.BlockSpec(memory_space=pltpu.MemorySpace.SMEM),   # a2
            pl.BlockSpec((TR, E), lambda r: (r, 0)),             # emb rows (f32)
            pl.BlockSpec((E, Hp), lambda r: (0, 0)),             # w1 (bf16)
            pl.BlockSpec((1, Hp), lambda r: (0, 0)),             # b1
            pl.BlockSpec((Hp, H3p), lambda r: (0, 0)),           # wih (bf16)
            pl.BlockSpec((1, H3p), lambda r: (0, 0)),            # bih (+folded bhh r,z)
        ],
        out_specs=pl.BlockSpec((TR, H3p), lambda r: (r, 0)),
        compiler_params=pltpu.CompilerParams(
            dimension_semantics=("parallel",),
            vmem_limit_bytes=32 * 1024 * 1024),
    )(a1, a2, emb, w1_t, b1, wih_t, bih)


# ----------------------------------------------------------------------------
# Kernel 2: whole GRU recurrence in one invocation (per batch tile) + fused head.
#   gx  : (L, TB, 3Hp) bf16, resident in VMEM, gate order (r, z, n)
#   whh : (Hp, 3Hp) fused hidden->gates matrix (bf16); gh = h @ whh, one matmul
#   bhn : (1, Hp)  hidden bias of the n gate (stays inside r*(.))
#   out : (TB, Vp) = PReLU(h_L) @ W2 + b2
# h is carried as a fori_loop value (vreg-resident), not a VMEM scratch.
# ----------------------------------------------------------------------------
def gru_head_kernel(a3_ref, gx_ref, whh_ref, bhn_ref, w2_ref, b2_ref, enc_ref):
    L = gx_ref.shape[0]
    Hp = whh_ref.shape[0]
    TB = enc_ref.shape[0]

    bhn = bhn_ref[...]                               # hoisted out of the time loop
    h0 = jnp.zeros((TB, Hp), jnp.float32)

    def step(t, h):
        gx_t = gx_ref[t].astype(jnp.float32)         # (TB, 3Hp)
        gh = jnp.dot(h.astype(jnp.bfloat16), whh_ref[...],
                     preferred_element_type=jnp.float32)   # one fused MXU matmul
        r = jax.nn.sigmoid(gx_t[:, 0:Hp] + gh[:, 0:Hp])
        z = jax.nn.sigmoid(gx_t[:, Hp:2 * Hp] + gh[:, Hp:2 * Hp])
        n = jnp.tanh(gx_t[:, 2 * Hp:3 * Hp] + r * (gh[:, 2 * Hp:3 * Hp] + bhn))
        return (1.0 - z) * n + z * h

    h = jax.lax.fori_loop(0, L, step, h0)

    a3 = a3_ref[0]
    y = jnp.where(h >= 0, h, a3 * h)                 # PReLU #3 (f32)
    enc_ref[...] = (jnp.dot(y.astype(jnp.bfloat16), w2_ref[...],
                            preferred_element_type=jnp.float32) + b2_ref[...])


def gru_and_head(gx_seq, a3, whh_f, bhn, w2_t, b2, TB):
    L, B, H3p = gx_seq.shape
    Hp = whh_f.shape[0]
    Vp = w2_t.shape[1]
    return pl.pallas_call(
        gru_head_kernel,
        out_shape=jax.ShapeDtypeStruct((B, Vp), jnp.float32),
        grid=(B // TB,),
        in_specs=[
            pl.BlockSpec(memory_space=pltpu.MemorySpace.SMEM),   # a3
            pl.BlockSpec((L, TB, H3p), lambda b: (0, b, 0)),     # gx (bf16, resident)
            pl.BlockSpec((Hp, H3p), lambda b: (0, 0)),           # whh fused (bf16)
            pl.BlockSpec((1, Hp), lambda b: (0, 0)),             # b_hn
            pl.BlockSpec((Hp, Vp), lambda b: (0, 0)),            # w2 (bf16)
            pl.BlockSpec((1, Vp), lambda b: (0, 0)),             # b2
        ],
        out_specs=pl.BlockSpec((TB, Vp), lambda b: (b, 0)),
        compiler_params=pltpu.CompilerParams(
            dimension_semantics=("parallel",),
            vmem_limit_bytes=64 * 1024 * 1024),
    )(a3, gx_seq, whh_f, bhn, w2_t, b2)


# ----------------------------------------------------------------------------
# Parameters (PyTorch-equivalent, f32) + kernel-format preparation
# ----------------------------------------------------------------------------
def init_params(key, vocab, E, H, V):
    ks = jax.random.split(key, 8)
    s = 0.1
    return dict(
        emb_table=jax.random.normal(ks[0], (vocab, E), jnp.float32) * s,
        a1=jnp.full((1, 1), 0.25, jnp.float32),              # PReLU default
        w1_t=jax.random.normal(ks[1], (E, H), jnp.float32) * s,
        b1=jax.random.normal(ks[2], (1, H), jnp.float32) * s,
        a2=jnp.full((1, 1), 0.25, jnp.float32),
        # GRU weights (PyTorch gate order r, z, n), stored transposed
        wih_t=jax.random.normal(ks[3], (H, 3 * H), jnp.float32) * s,
        bih=jax.random.normal(ks[4], (1, 3 * H), jnp.float32) * s,
        whh_t=jax.random.normal(ks[5], (3, H, H), jnp.float32) * s,
        bhh=jax.random.normal(ks[6], (3, 1, H), jnp.float32) * s,
        a3=jnp.full((1, 1), 0.25, jnp.float32),
        w2_t=jax.random.normal(ks[7], (H, V), jnp.float32) * s,
        b2=jnp.zeros((1, V), jnp.float32),
    )


def prepare_params(p):
    """Kernel-format params: bf16 MXU operands, fused whh, folded r/z hidden
    bias, and H/V zero-padded to multiples of 128 for lane-dense gate slicing
    and unmasked output stores.  Padding is exact: padded hidden lanes stay 0
    through every stage (PReLU(0)=0, zero weight rows/cols, zero biases)."""
    H = p["w1_t"].shape[1]
    V = p["w2_t"].shape[1]
    Hp = _round_up(H, 128)
    Vp = _round_up(V, 128)

    def pad_cols(m, n):
        return jnp.pad(m, ((0, 0), (0, n - m.shape[1])))

    def pad_rows(m, n):
        return jnp.pad(m, ((0, n - m.shape[0]), (0, 0)))

    w1 = pad_cols(p["w1_t"], Hp)                                   # (E, Hp)
    b1 = pad_cols(p["b1"], Hp)                                     # (1, Hp)

    wih = p["wih_t"]                                               # (H, 3H)
    wih_p = jnp.concatenate(
        [pad_cols(pad_rows(wih[:, g * H:(g + 1) * H], Hp), Hp) for g in range(3)],
        axis=-1)                                                   # (Hp, 3Hp)

    bih = p["bih"]                                                 # (1, 3H)
    bhh = p["bhh"]                                                 # (3, 1, H)
    bih_gates = [bih[:, 0:H] + bhh[0], bih[:, H:2 * H] + bhh[1], bih[:, 2 * H:3 * H]]
    bih_p = jnp.concatenate([pad_cols(g, Hp) for g in bih_gates], axis=-1)  # (1, 3Hp)

    whh_p = jnp.concatenate(
        [pad_cols(pad_rows(p["whh_t"][g], Hp), Hp) for g in range(3)],
        axis=-1)                                                   # (Hp, 3Hp)
    bhn_p = pad_cols(bhh[2], Hp)                                   # (1, Hp)

    w2_p = pad_cols(pad_rows(p["w2_t"], Hp), Vp)                   # (Hp, Vp)
    b2_p = pad_cols(p["b2"], Vp)                                   # (1, Vp)

    return dict(
        emb_table=p["emb_table"],
        a1=p["a1"].reshape(-1), a2=p["a2"].reshape(-1), a3=p["a3"].reshape(-1),
        w1_t=w1.astype(jnp.bfloat16),
        b1=b1,
        wih_t=wih_p.astype(jnp.bfloat16),
        bih=bih_p,
        whh_t=whh_p.astype(jnp.bfloat16),
        bhn=bhn_p,
        w2_t=w2_p.astype(jnp.bfloat16),
        b2=b2_p,
    )


# ----------------------------------------------------------------------------
# Forward wrapper
# ----------------------------------------------------------------------------
@functools.partial(jax.jit, static_argnames=("max_voice_len", "out_dim"))
def voice_in_forward(kp, voice, max_voice_len, out_dim):
    # voice: (episodes, steps, seq_in, vocab)  -- one-hot-like scores
    episodes, steps, seq_in, vocab = voice.shape
    B = episodes * steps
    L = max_voice_len
    Hp = kp["whh_t"].shape[0]
    H3p = kp["wih_t"].shape[1]
    Vp = kp["w2_t"].shape[1]

    # model_start: flatten (episodes, steps) -> batch; pad_zeros; argmax -> tokens
    v = voice.reshape(B, seq_in, vocab)
    v = jnp.pad(v, ((0, 0), (0, L - seq_in), (0, 0)))
    tokens = jnp.argmax(v, axis=-1).astype(jnp.int32)        # (B, L)

    # Time-major gather order -> kernel-1 output is already (L, B, 3Hp) row-major.
    tokens_tm = tokens.T.reshape(-1)                         # (L*B,)
    emb = jnp.take(kp["emb_table"], tokens_tm, axis=0)       # (L*B, E) f32

    rows = L * B
    TR = _pick_row_tile(rows)                                # divides rows: no pad/slice

    # Kernel 1: PReLU -> Linear -> PReLU -> input-gate projection (row-tiled grid)
    gx = input_projection(emb, kp["a1"], kp["a2"], kp["w1_t"], kp["b1"],
                          kp["wih_t"], kp["bih"], TR)        # (rows, 3Hp) bf16
    gx_seq = gx.reshape(L, B, H3p)                           # free reshape, no copy

    # Kernel 2: whole GRU recurrence (in-kernel time loop) + PReLU + output Linear
    TB = _pick_batch_tile(B, L, H3p, Hp, Vp)
    enc = gru_and_head(gx_seq, kp["a3"], kp["whh_t"], kp["bhn"],
                       kp["w2_t"], kp["b2"], TB)             # (B, Vp) f32
    return enc[:, :out_dim].reshape(episodes, steps, out_dim)


# ----------------------------------------------------------------------------
# Pure-JAX reference (mirrors the PyTorch forward in f32, dropout off)
# ----------------------------------------------------------------------------
def voice_in_reference(params, voice, max_voice_len):
    episodes, steps, seq_in, vocab = voice.shape
    B = episodes * steps
    H = params["w1_t"].shape[1]
    v = voice.reshape(B, seq_in, vocab)
    v = jnp.pad(v, ((0, 0), (0, max_voice_len - seq_in), (0, 0)))
    tokens = jnp.argmax(v, axis=-1).astype(jnp.int32)

    def prelu(x, a):
        return jnp.where(x >= 0, x, a[0, 0] * x)

    e = jnp.take(params["emb_table"], tokens, axis=0)
    e = prelu(e, params["a1"])
    x = e @ params["w1_t"] + params["b1"]
    x = prelu(x, params["a2"])

    gx = x @ params["wih_t"] + params["bih"]                 # (B, L, 3H)

    def step(h, gx_t):
        gh = jnp.einsum("bh,ghk->gbk", h, params["whh_t"]) + params["bhh"]  # (3,B,H)
        r = jax.nn.sigmoid(gx_t[:, 0 * H:1 * H] + gh[0])
        z = jax.nn.sigmoid(gx_t[:, 1 * H:2 * H] + gh[1])
        n = jnp.tanh(gx_t[:, 2 * H:3 * H] + r * gh[2])
        h_new = (1.0 - z) * n + z * h
        return h_new, None

    h0 = jnp.zeros((B, H), jnp.float32)
    h_last, _ = jax.lax.scan(step, h0, jnp.swapaxes(gx, 0, 1))

    y = prelu(h_last, params["a3"])
    enc = y @ params["w2_t"] + params["b2"]
    V = params["w2_t"].shape[1]
    return enc.reshape(episodes, steps, V)


if __name__ == "__main__":
    # Small, forward-consistent shapes
    episodes, steps = 2, 2
    voice_shape = 16          # vocab (num_embeddings)
    char_encode_size = 8
    hidden_size = 32
    voice_encode_size = 16
    seq_in = 6
    max_voice_len = 8

    key = jax.random.PRNGKey(0)
    k_param, k_in = jax.random.split(key)
    params = init_params(k_param, voice_shape, char_encode_size, hidden_size,
                         voice_encode_size)
    kparams = prepare_params(params)

    voice = jax.random.normal(
        k_in, (episodes, steps, seq_in, voice_shape), jnp.float32)

    out = voice_in_forward(kparams, voice, max_voice_len=max_voice_len,
                           out_dim=voice_encode_size)
    out = jax.block_until_ready(out)

    ref = voice_in_reference(params, voice, max_voice_len)
    assert out.shape == (episodes, steps, voice_encode_size), out.shape
    max_err = float(jnp.max(jnp.abs(out - ref)))
    assert jnp.allclose(out, ref, rtol=2e-2, atol=2e-2), max_err

    print("KERNEL_OK")
</pallas_src>

<mosaic_0001>
module attributes {stable_mosaic.version = 11 : i64} {
  func.func @proj_kernel(%arg0: i32, %arg1: memref<1xf32, #tpu.memory_space<smem>>, %arg2: memref<1xf32, #tpu.memory_space<smem>>, %arg3: memref<16x8xf32, #tpu.memory_space<vmem>>, %arg4: memref<8x128xbf16, #tpu.memory_space<vmem>>, %arg5: memref<1x128xf32, #tpu.memory_space<vmem>>, %arg6: memref<128x384xbf16, #tpu.memory_space<vmem>>, %arg7: memref<1x384xf32, #tpu.memory_space<vmem>>, %arg8: memref<16x384xbf16, #tpu.memory_space<vmem>>) attributes {dimension_semantics = [#tpu.dimension_semantics<parallel>], iteration_bounds = array<i64: 2>, scalar_prefetch = 0 : i64, scratch_operands = 0 : i64, tpu.core_type = #tpu.core_type<tc>, window_params = [{transform_indices = @transform_0, window_bounds = array<i64: 1>}, {transform_indices = @transform_1, window_bounds = array<i64: 1>}, {transform_indices = @transform_2, window_bounds = array<i64: 16, 8>}, {pipeline_mode = #tpu.pipeline_mode<synchronous>, transform_indices = @transform_3, window_bounds = array<i64: 8, 128>}, {pipeline_mode = #tpu.pipeline_mode<synchronous>, transform_indices = @transform_4, window_bounds = array<i64: 1, 128>}, {pipeline_mode = #tpu.pipeline_mode<synchronous>, transform_indices = @transform_5, window_bounds = array<i64: 128, 384>}, {pipeline_mode = #tpu.pipeline_mode<synchronous>, transform_indices = @transform_6, window_bounds = array<i64: 1, 384>}, {transform_indices = @transform_7, window_bounds = array<i64: 16, 384>}]} {
    %c0 = arith.constant 0 : index
    %0 = memref.load %arg1[%c0] : memref<1xf32, #tpu.memory_space<smem>>
    %c0_0 = arith.constant 0 : index
    %1 = memref.load %arg2[%c0_0] : memref<1xf32, #tpu.memory_space<smem>>
    %c0_1 = arith.constant 0 : index
    %c0_2 = arith.constant 0 : index
    %2 = vector.load %arg3[%c0_1, %c0_2] : memref<16x8xf32, #tpu.memory_space<vmem>>, vector<16x8xf32>
    %cst = arith.constant 0.000000e+00 : f32
    %3 = vector.broadcast %cst : f32 to vector<16x8xf32>
    %4 = arith.cmpf oge, %2, %3 : vector<16x8xf32>
    %5 = vector.broadcast %0 : f32 to vector<16x8xf32>
    %6 = arith.mulf %5, %2 : vector<16x8xf32>
    %7 = arith.select %4, %2, %6 : vector<16x8xi1>, vector<16x8xf32>
    %8 = arith.truncf %7 : vector<16x8xf32> to vector<16x8xbf16>
    %c0_3 = arith.constant 0 : index
    %c0_4 = arith.constant 0 : index
    %9 = vector.load %arg4[%c0_3, %c0_4] : memref<8x128xbf16, #tpu.memory_space<vmem>>, vector<8x128xbf16>
    %cst_5 = arith.constant dense<0.000000e+00> : vector<16x128xf32>
    %10 = tpu.matmul %8, %9, %cst_5 {dimension_numbers = #tpu.dot_dimension_numbers<[1], [0], [0], [1], [0, 0, 1, 1], [], []>} : vector<16x8xbf16>, vector<8x128xbf16>, vector<16x128xf32> -> vector<16x128xf32>
    %c0_6 = arith.constant 0 : index
    %c0_7 = arith.constant 0 : index
    %11 = vector.load %arg5[%c0_6, %c0_7] : memref<1x128xf32, #tpu.memory_space<vmem>>, vector<1x128xf32>
    %12 = vector.broadcast %11 : vector<1x128xf32> to vector<16x128xf32>
    %13 = arith.addf %10, %12 : vector<16x128xf32>
    %cst_8 = arith.constant 0.000000e+00 : f32
    %14 = vector.broadcast %cst_8 : f32 to vector<16x128xf32>
    %15 = arith.cmpf oge, %13, %14 : vector<16x128xf32>
    %16 = vector.broadcast %1 : f32 to vector<16x128xf32>
    %17 = arith.mulf %16, %13 : vector<16x128xf32>
    %18 = arith.select %15, %13, %17 : vector<16x128xi1>, vector<16x128xf32>
    %19 = arith.truncf %18 : vector<16x128xf32> to vector<16x128xbf16>
    %c0_9 = arith.constant 0 : index
    %c0_10 = arith.constant 0 : index
    %20 = vector.load %arg6[%c0_9, %c0_10] : memref<128x384xbf16, #tpu.memory_space<vmem>>, vector<128x384xbf16>
    %cst_11 = arith.constant dense<0.000000e+00> : vector<16x384xf32>
    %21 = tpu.matmul %19, %20, %cst_11 {dimension_numbers = #tpu.dot_dimension_numbers<[1], [0], [0], [1], [0, 0, 1, 1], [], []>} : vector<16x128xbf16>, vector<128x384xbf16>, vector<16x384xf32> -> vector<16x384xf32>
    %c0_12 = arith.constant 0 : index
    %c0_13 = arith.constant 0 : index
    %22 = vector.load %arg7[%c0_12, %c0_13] : memref<1x384xf32, #tpu.memory_space<vmem>>, vector<1x384xf32>
    %23 = vector.broadcast %22 : vector<1x384xf32> to vector<16x384xf32>
    %24 = arith.addf %21, %23 : vector<16x384xf32>
    %25 = arith.truncf %24 : vector<16x384xf32> to vector<16x384xbf16>
    %c0_14 = arith.constant 0 : index
    %c0_15 = arith.constant 0 : index
    %26 = vector.load %arg8[%c0_14, %c0_15] : memref<16x384xbf16, #tpu.memory_space<vmem>>, vector<16x384xbf16>
    tpu.vector_store %arg8[%c0_14, %c0_15], %25 {strides = array<i32>} : memref<16x384xbf16, #tpu.memory_space<vmem>>, vector<16x384xbf16>,
    return
  }
  func.func @transform_0(%arg0: i32) -> i32 {
    %c0_i32 = arith.constant 0 : i32
    %c0_i32_0 = arith.constant 0 : i32
    return %c0_i32 : i32
  }
  func.func @transform_1(%arg0: i32) -> i32 {
    %c0_i32 = arith.constant 0 : i32
    %c0_i32_0 = arith.constant 0 : i32
    return %c0_i32 : i32
  }
  func.func @transform_2(%arg0: i32) -> (i32, i32) {
    %c0_i32 = arith.constant 0 : i32
    %c0_i32_0 = arith.constant 0 : i32
    return %arg0, %c0_i32 : i32, i32
  }
  func.func @transform_3(%arg0: i32) -> (i32, i32) {
    %c0_i32 = arith.constant 0 : i32
    %c0_i32_0 = arith.constant 0 : i32
    %c0_i32_1 = arith.constant 0 : i32
    return %c0_i32, %c0_i32_0 : i32, i32
  }
  func.func @transform_4(%arg0: i32) -> (i32, i32) {
    %c0_i32 = arith.constant 0 : i32
    %c0_i32_0 = arith.constant 0 : i32
    %c0_i32_1 = arith.constant 0 : i32
    return %c0_i32, %c0_i32_0 : i32, i32
  }
  func.func @transform_5(%arg0: i32) -> (i32, i32) {
    %c0_i32 = arith.constant 0 : i32
    %c0_i32_0 = arith.constant 0 : i32
    %c0_i32_1 = arith.constant 0 : i32
    return %c0_i32, %c0_i32_0 : i32, i32
  }
  func.func @transform_6(%arg0: i32) -> (i32, i32) {
    %c0_i32 = arith.constant 0 : i32
    %c0_i32_0 = arith.constant 0 : i32
    %c0_i32_1 = arith.constant 0 : i32
    return %c0_i32, %c0_i32_0 : i32, i32
  }
  func.func @transform_7(%arg0: i32) -> (i32, i32) {
    %c0_i32 = arith.constant 0 : i32
    %c0_i32_0 = arith.constant 0 : i32
    return %arg0, %c0_i32 : i32, i32
  }
}

module attributes {stable_mosaic.version = 11 : i64} {
  func.func @gru_head_kernel(%arg0: i32, %arg1: memref<1xf32, #tpu.memory_space<smem>>, %arg2: memref<8x4x384xbf16, #tpu.memory_space<vmem>>, %arg3: memref<128x384xbf16, #tpu.memory_space<vmem>>, %arg4: memref<1x128xf32, #tpu.memory_space<vmem>>, %arg5: memref<128x128xbf16, #tpu.memory_space<vmem>>, %arg6: memref<1x128xf32, #tpu.memory_space<vmem>>, %arg7: memref<4x128xf32, #tpu.memory_space<vmem>>) attributes {dimension_semantics = [#tpu.dimension_semantics<parallel>], iteration_bounds = array<i64: 1>, scalar_prefetch = 0 : i64, scratch_operands = 0 : i64, tpu.core_type = #tpu.core_type<tc>, window_params = [{transform_indices = @transform_0, window_bounds = array<i64: 1>}, {transform_indices = @transform_1, window_bounds = array<i64: 8, 4, 384>}, {pipeline_mode = #tpu.pipeline_mode<synchronous>, transform_indices = @transform_2, window_bounds = array<i64: 128, 384>}, {pipeline_mode = #tpu.pipeline_mode<synchronous>, transform_indices = @transform_3, window_bounds = array<i64: 1, 128>}, {pipeline_mode = #tpu.pipeline_mode<synchronous>, transform_indices = @transform_4, window_bounds = array<i64: 128, 128>}, {pipeline_mode = #tpu.pipeline_mode<synchronous>, transform_indices = @transform_5, window_bounds = array<i64: 1, 128>}, {transform_indices = @transform_6, window_bounds = array<i64: 4, 128>}]} {
    %c0 = arith.constant 0 : index
    %c0_0 = arith.constant 0 : index
    %0 = vector.load %arg4[%c0, %c0_0] : memref<1x128xf32, #tpu.memory_space<vmem>>, vector<1x128xf32>
    %cst = arith.constant 0.000000e+00 : f32
    %1 = vector.broadcast %cst : f32 to vector<4x128xf32>
    %c0_i32 = arith.constant 0 : i32
    %c8_i32 = arith.constant 8 : i32
    %2 = arith.addi %c0_i32, %c8_i32 : i32
    %c1_i32 = arith.constant 1 : i32
    %3 = scf.for %arg8 = %c0_i32 to %2 step %c1_i32 iter_args(%arg9 = %1) -> (vector<4x128xf32>)  : i32 {
      %17 = arith.index_cast %arg8 : i32 to index
      %c0_11 = arith.constant 0 : index
      %c0_12 = arith.constant 0 : index
      %18 = vector.load %arg2[%17, %c0_11, %c0_12] : memref<8x4x384xbf16, #tpu.memory_space<vmem>>, vector<1x4x384xbf16>
      %19 = vector.shape_cast %18 : vector<1x4x384xbf16> to vector<4x384xbf16>
      %20 = arith.extf %19 : vector<4x384xbf16> to vector<4x384xf32>
      %21 = arith.truncf %arg9 : vector<4x128xf32> to vector<4x128xbf16>
      %c0_13 = arith.constant 0 : index
      %c0_14 = arith.constant 0 : index
      %22 = vector.load %arg3[%c0_13, %c0_14] : memref<128x384xbf16, #tpu.memory_space<vmem>>, vector<128x384xbf16>
      %cst_15 = arith.constant dense<0.000000e+00> : vector<4x384xf32>
      %23 = tpu.matmul %21, %22, %cst_15 {dimension_numbers = #tpu.dot_dimension_numbers<[1], [0], [0], [1], [0, 0, 1, 1], [], []>} : vector<4x128xbf16>, vector<128x384xbf16>, vector<4x384xf32> -> vector<4x384xf32>
      %24 = vector.extract_strided_slice %20 {offsets = [0, 0], sizes = [4, 128], strides = [1, 1]} : vector<4x384xf32> to vector<4x128xf32>
      %25 = vector.extract_strided_slice %23 {offsets = [0, 0], sizes = [4, 128], strides = [1, 1]} : vector<4x384xf32> to vector<4x128xf32>
      %26 = arith.addf %24, %25 : vector<4x128xf32>
      %27 = arith.negf %26 : vector<4x128xf32>
      %28 = math.exp %27 : vector<4x128xf32>
      %cst_16 = arith.constant 1.000000e+00 : f32
      %29 = vector.broadcast %cst_16 : f32 to vector<4x128xf32>
      %30 = arith.addf %29, %28 : vector<4x128xf32>
      %31 = arith.divf %29, %30 : vector<4x128xf32>
      %32 = vector.extract_strided_slice %20 {offsets = [0, 128], sizes = [4, 128], strides = [1, 1]} : vector<4x384xf32> to vector<4x128xf32>
      %33 = vector.extract_strided_slice %23 {offsets = [0, 128], sizes = [4, 128], strides = [1, 1]} : vector<4x384xf32> to vector<4x128xf32>
      %34 = arith.addf %32, %33 : vector<4x128xf32>
      %35 = arith.negf %34 : vector<4x128xf32>
      %36 = math.exp %35 : vector<4x128xf32>
      %cst_17 = arith.constant 1.000000e+00 : f32
      %37 = vector.broadcast %cst_17 : f32 to vector<4x128xf32>
      %38 = arith.addf %37, %36 : vector<4x128xf32>
      %39 = arith.divf %37, %38 : vector<4x128xf32>
      %40 = vector.extract_strided_slice %20 {offsets = [0, 256], sizes = [4, 128], strides = [1, 1]} : vector<4x384xf32> to vector<4x128xf32>
      %41 = vector.extract_strided_slice %23 {offsets = [0, 256], sizes = [4, 128], strides = [1, 1]} : vector<4x384xf32> to vector<4x128xf32>
      %42 = vector.broadcast %0 : vector<1x128xf32> to vector<4x128xf32>
      %43 = arith.addf %41, %42 : vector<4x128xf32>
      %44 = arith.mulf %31, %43 : vector<4x128xf32>
      %45 = arith.addf %40, %44 : vector<4x128xf32>
      %46 = math.tanh %45 : vector<4x128xf32>
      %cst_18 = arith.constant 1.000000e+00 : f32
      %47 = vector.broadcast %cst_18 : f32 to vector<4x128xf32>
      %48 = arith.subf %47, %39 : vector<4x128xf32>
      %49 = arith.mulf %48, %46 : vector<4x128xf32>
      %50 = arith.mulf %39, %arg9 : vector<4x128xf32>
      %51 = arith.addf %49, %50 : vector<4x128xf32>
      scf.yield %51 : vector<4x128xf32>
    }
    %c8_i32_1 = arith.constant 8 : i32
    %c0_2 = arith.constant 0 : index
    %4 = memref.load %arg1[%c0_2] : memref<1xf32, #tpu.memory_space<smem>>
    %cst_3 = arith.constant 0.000000e+00 : f32
    %5 = vector.broadcast %cst_3 : f32 to vector<4x128xf32>
    %6 = arith.cmpf oge, %3, %5 : vector<4x128xf32>
    %7 = vector.broadcast %4 : f32 to vector<4x128xf32>
    %8 = arith.mulf %7, %3 : vector<4x128xf32>
    %9 = arith.select %6, %3, %8 : vector<4x128xi1>, vector<4x128xf32>
    %10 = arith.truncf %9 : vector<4x128xf32> to vector<4x128xbf16>
    %c0_4 = arith.constant 0 : index
    %c0_5 = arith.constant 0 : index
    %11 = vector.load %arg5[%c0_4, %c0_5] : memref<128x128xbf16, #tpu.memory_space<vmem>>, vector<128x128xbf16>
    %cst_6 = arith.constant dense<0.000000e+00> : vector<4x128xf32>
    %12 = tpu.matmul %10, %11, %cst_6 {dimension_numbers = #tpu.dot_dimension_numbers<[1], [0], [0], [1], [0, 0, 1, 1], [], []>} : vector<4x128xbf16>, vector<128x128xbf16>, vector<4x128xf32> -> vector<4x128xf32>
    %c0_7 = arith.constant 0 : index
    %c0_8 = arith.constant 0 : index
    %13 = vector.load %arg6[%c0_7, %c0_8] : memref<1x128xf32, #tpu.memory_space<vmem>>, vector<1x128xf32>
    %14 = vector.broadcast %13 : vector<1x128xf32> to vector<4x128xf32>
    %15 = arith.addf %12, %14 : vector<4x128xf32>
    %c0_9 = arith.constant 0 : index
    %c0_10 = arith.constant 0 : index
    %16 = vector.load %arg7[%c0_9, %c0_10] : memref<4x128xf32, #tpu.memory_space<vmem>>, vector<4x128xf32>
    tpu.vector_store %arg7[%c0_9, %c0_10], %15 {strides = array<i32>} : memref<4x128xf32, #tpu.memory_space<vmem>>, vector<4x128xf32>,
    return
  }
  func.func @transform_0(%arg0: i32) -> i32 {
    %c0_i32 = arith.constant 0 : i32
    %c0_i32_0 = arith.constant 0 : i32
    return %c0_i32 : i32
  }
  func.func @transform_1(%arg0: i32) -> (i32, i32, i32) {
    %c0_i32 = arith.constant 0 : i32
    %c0_i32_0 = arith.constant 0 : i32
    %c0_i32_1 = arith.constant 0 : i32
    return %c0_i32, %arg0, %c0_i32_0 : i32, i32, i32
  }
  func.func @transform_2(%arg0: i32) -> (i32, i32) {
    %c0_i32 = arith.constant 0 : i32
    %c0_i32_0 = arith.constant 0 : i32
    %c0_i32_1 = arith.constant 0 : i32
    return %c0_i32, %c0_i32_0 : i32, i32
  }
  func.func @transform_3(%arg0: i32) -> (i32, i32) {
    %c0_i32 = arith.constant 0 : i32
    %c0_i32_0 = arith.constant 0 : i32
    %c0_i32_1 = arith.constant 0 : i32
    return %c0_i32, %c0_i32_0 : i32, i32
  }
  func.func @transform_4(%arg0: i32) -> (i32, i32) {
    %c0_i32 = arith.constant 0 : i32
    %c0_i32_0 = arith.constant 0 : i32
    %c0_i32_1 = arith.constant 0 : i32
    return %c0_i32, %c0_i32_0 : i32, i32
  }
  func.func @transform_5(%arg0: i32) -> (i32, i32) {
    %c0_i32 = arith.constant 0 : i32
    %c0_i32_0 = arith.constant 0 : i32
    %c0_i32_1 = arith.constant 0 : i32
    return %c0_i32, %c0_i32_0 : i32, i32
  }
  func.func @transform_6(%arg0: i32) -> (i32, i32) {
    %c0_i32 = arith.constant 0 : i32
    %c0_i32_0 = arith.constant 0 : i32
    return %arg0, %c0_i32 : i32, i32
  }
}

</mosaic_0001>

<bundles_post_ra>
// kernel: voice_in_forward.2
= control target key start
LH: loop header
LB: loop body
LE: loop exit
PB: predicated region body
PF: predicated region fallthrough
CT: control target
= control target key end

     0   :  { %s806_s28 = smov 0   ;;  %s984_s0 = inlined_call_operand.<no memory space> [shape: f32[1], index: 0, kind: input, shape index: {}]   ;;  %s985_s1 = inlined_call_operand.<no memory space> [shape: f32[1], index: 1, kind: input, shape index: {}]   ;;  %s986_s2 = inlined_call_operand.vmem [shape: f32[32,8], index: 2, kind: input, shape index: {}]   ;;  %s987_s3 = inlined_call_operand.vmem [shape: bf16[8,128], index: 3, kind: input, shape index: {}]   ;;  %s988_s4 = inlined_call_operand.vmem [shape: f32[1,128], index: 4, kind: input, shape index: {}]   ;;  %s989_s5 = inlined_call_operand.vmem [shape: bf16[128,384], index: 5, kind: input, shape index: {}]   ;;  %s990_s6 = inlined_call_operand.vmem [shape: f32[1,384], index: 6, kind: input, shape index: {}]   ;;  %s991_s7 = inlined_call_operand.vmem [shape: bf16[32,384], index: 7, kind: output, shape index: {}]  }
   0x1   :  { %12 = sst [smem:[#allocation2]] %s984_s0 }
   0x2   :  { %13 = sst [smem:[#allocation3]] %s985_s1 }
   0x3 LB: > { %s610_s29 = sadd.s32 4294967295, %s758_s28   ;;  %p614_p0 = scmp.ge.s32.totalorder %s758_s28, 1  ;;  %s758_s28 = sphi %s806_s28, %s19_s28  }
   0x4   : > { %p240_p1 = scmp.lt.s32.totalorder %s758_s28, 3 }
   0x6   : > { %p241_p2 = pnand %p614_p0, %p240_p1 }
   0x7   : > { %s615_s1 = sshll.u32 (!%p241_p2), %s610_s29, 1  ;;  %s817_s8 = sld [smem:[#allocation2]] (!%p241_p2) }
   0x8   : > { %244 = sbr.rel (%p241_p2) target bundleno = 312 (0x138), region = 48  ;;  %p274_p3 = scmp.lt.s32.totalorder (!%p241_p2), %s615_s1, 3 }
   0x9   : > { %s288_s18 = sld [smem:[#allocation3]] (!%p241_p2) }
   0xd   : > { %v299_v0 = vld [vmem:[%s987_s3] sm:$0xf]  ;;  %vm308_vm0 = vcmask 1043456   ;;  %v706_v2 = vld [vmem:[%s989_s5 + $0xa8] sm:$0xf]  ;;  %s993_s1 = smov (!%p274_p3, %s615_s1), 3  ;;  %v293_v17 = vstv %s817_s8 }
   0xe   : > { %v310_v1 = vsel %vm308_vm0, %v299_v0, 0  ;;  %v740_v3 = vld [vmem:[%s989_s5 + $0xb0] sm:$0xf0]  ;;  %v739_v4 = vld [vmem:[%s989_s5 + $0xac] sm:$0xf]  ;;  %s616_s27 = sshll.u32 %s993_s1, 3 }
   0xf   : > { %319 = vmatpush.bf16.msra.mxu0 %v310_v1  ;;  %v708_v5 = vld [vmem:[%s989_s5 + $0xb4] sm:$0xf0]  ;;  %v707_v6 = vor.u32 %v740_v3, %v706_v2  ;;  %v714_v8 = vld [vmem:[%s989_s5 + $0xb0] sm:$0xf]  ;;  %v741_v9 = vld [vmem:[%s989_s5 + $0xb8] sm:$0xf0]  ;;  %s277_s12 = scalar_lea.vmem %s986_s2, %s616_s27 }
  0x10   : > { %v711_v7 = vor.u32 %v739_v4, %v708_v5  ;;  %v715_v10 = vor.u32 %v741_v9, %v714_v8  ;;  %v694_v11 = vld [vmem:[%s989_s5 + $0x90] sm:$0xf]  ;;  %v737_v12 = vld [vmem:[%s989_s5 + $0x98] sm:$0xf0]  ;;  %v736_v13 = vld [vmem:[%s989_s5 + $0x94] sm:$0xf] }
  0x11   : > { %502 = vmatpush.bf16.msra.mxu1 %v707_v6  ;;  %v695_v14 = vor.u32 %v737_v12, %v694_v11  ;;  %v696_v15 = vld [vmem:[%s989_s5 + $0x9c] sm:$0xf0]  ;;  %v702_v16 = vld [vmem:[%s989_s5 + $0x98] sm:$0xf]  ;;  %v738_v19 = vld [vmem:[%s989_s5 + $0xa0] sm:$0xf0] }
  0x12   : > { %516 = vmatpush.bf16.msra.mxu2 %v711_v7  ;;  %530 = vmatpush.bf16.msra.mxu3 %v715_v10  ;;  %v699_v18 = vor.u32 %v736_v13, %v696_v15  ;;  %v682_v20 = vld [vmem:[%s989_s5 + $0x78] sm:$0xf]  ;;  %v734_v21 = vld [vmem:[%s989_s5 + $0x80] sm:$0xf0]  ;;  %v290_v23 = vld [vmem:[%s277_s12 + $0x8] sm:$0xff]  ;;  %v703_v24 = vor.u32 %v738_v19, %v702_v16  ;;  %vm304_vm3 = vcmask 64512  }
  0x13   : > { %v289_v22 = vld [vmem:[%s277_s12] sm:$0xff]  ;;  %v733_v25 = vld [vmem:[%s989_s5 + $0x7c] sm:$0xf]  ;;  %vm292_vm2 = vcmp.ge.f32.partialorder %v290_v23, 0.0  ;;  %v295_v27 = vmul.f32 %v293_v17, %v290_v23  ;;  %v684_v28 = vld [vmem:[%s989_s5 + $0x84] sm:$0xf0]  ;;  %v683_v30 = vor.u32 %v734_v21, %v682_v20  ;;  %v328_v21 = vstv %s288_s18 }
  0x14   : > { %vm291_vm1 = vcmp.ge.f32.partialorder %v289_v22, 0.0  ;;  %v294_v26 = vmul.f32 %v293_v17, %v289_v22  ;;  %v690_v29 = vld [vmem:[%s989_s5 + $0x80] sm:$0xf]  ;;  %v735_v31 = vld [vmem:[%s989_s5 + $0x88] sm:$0xf0]  ;;  %v687_v35 = vor.u32 %v733_v25, %v684_v28  ;;  %s742_s22 = smul.u32 12, %s993_s1 }
  0x15   : > { %503 = vmatpush.bf16.msra.mxu1 %v695_v14  ;;  %v670_v32 = vld [vmem:[%s989_s5 + $0x60] sm:$0xf]  ;;  %v297_v34 = vsel %vm292_vm2, %v290_v23, %v295_v27  ;;  %v691_v36 = vor.u32 %v735_v31, %v690_v29  ;;  %v731_v37 = vld [vmem:[%s989_s5 + $0x68] sm:$0xf0]  ;;  %v730_v38 = vld [vmem:[%s989_s5 + $0x64] sm:$0xf] }
  0x16   : > { %517 = vmatpush.bf16.msra.mxu2 %v699_v18  ;;  %v296_v33 = vsel %vm291_vm1, %v289_v22, %v294_v26  ;;  %531 = vmatpush.bf16.msra.mxu3 %v703_v24  ;;  %v672_v39 = vld [vmem:[%s989_s5 + $0x6c] sm:$0xf0]  ;;  %v678_v41 = vld [vmem:[%s989_s5 + $0x68] sm:$0xf]  ;;  %v732_v42 = vld [vmem:[%s989_s5 + $0x70] sm:$0xf0]  ;;  %v671_v43 = vor.u32 %v731_v37, %v670_v32  ;;  %s284_s25 = scalar_lea.vmem %s991_s7, %s742_s22 }
  0x17   : > { %v298_v40 = vpack.c.bf16 %v297_v34, %v296_v33  ;;  %v675_v44 = vor.u32 %v730_v38, %v672_v39  ;;  %v679_v45 = vor.u32 %v732_v42, %v678_v41  ;;  %v658_v46 = vld [vmem:[%s989_s5 + $0x48] sm:$0xf]  ;;  %v728_v47 = vld [vmem:[%s989_s5 + $0x50] sm:$0xf0]  ;;  %v727_v48 = vld [vmem:[%s989_s5 + $0x4c] sm:$0xf] }
  0x18   : > { %v659_v49 = vor.u32 %v728_v47, %v658_v46  ;;  %v660_v50 = vld [vmem:[%s989_s5 + $0x54] sm:$0xf0]  ;;  %v666_v51 = vld [vmem:[%s989_s5 + $0x50] sm:$0xf]  ;;  %v729_v52 = vld [vmem:[%s989_s5 + $0x58] sm:$0xf0] }
  0x19   : > { %619 = vmatmul.msk.bf16.vlgmr.msra.gmra.mxu0 %vm304_vm3, %v298_v40  ;;  %504 = vmatpush.bf16.msra.mxu1 %v683_v30  ;;  %v663_v53 = vor.u32 %v727_v48, %v660_v50  ;;  %v667_v54 = vor.u32 %v729_v52, %v666_v51  ;;  %v646_v55 = vld [vmem:[%s989_s5 + $0x30] sm:$0xf]  ;;  %v725_v56 = vld [vmem:[%s989_s5 + $0x38] sm:$0xf0]  ;;  %v724_v57 = vld [vmem:[%s989_s5 + $0x34] sm:$0xf] }
  0x1a   : > { %518 = vmatpush.bf16.msra.mxu2 %v687_v35  ;;  %532 = vmatpush.bf16.msra.mxu3 %v691_v36  ;;  %v647_v58 = vor.u32 %v725_v56, %v646_v55  ;;  %v648_v59 = vld [vmem:[%s989_s5 + $0x3c] sm:$0xf0]  ;;  %v654_v60 = vld [vmem:[%s989_s5 + $0x38] sm:$0xf]  ;;  %v726_v61 = vld [vmem:[%s989_s5 + $0x40] sm:$0xf0] }
  0x1b   : > { %v651_v62 = vor.u32 %v724_v57, %v648_v59  ;;  %v655_v63 = vor.u32 %v726_v61, %v654_v60  ;;  %v634_v0 = vld [vmem:[%s989_s5 + $0x18] sm:$0xf]  ;;  %v722_v1 = vld [vmem:[%s989_s5 + $0x20] sm:$0xf0]  ;;  %v721_v2 = vld [vmem:[%s989_s5 + $0x1c] sm:$0xf] }
  0x1c   : > { %v635_v3 = vor.u32 %v722_v1, %v634_v0  ;;  %v636_v4 = vld [vmem:[%s989_s5 + $0x24] sm:$0xf0]  ;;  %v642_v5 = vld [vmem:[%s989_s5 + $0x20] sm:$0xf]  ;;  %v723_v6 = vld [vmem:[%s989_s5 + $0x28] sm:$0xf0] }
  0x1d   : > { %505 = vmatpush.bf16.msra.mxu1 %v671_v43  ;;  %v639_v7 = vor.u32 %v721_v2, %v636_v4  ;;  %v643_v8 = vor.u32 %v723_v6, %v642_v5  ;;  %v622_v9 = vld [vmem:[%s989_s5] sm:$0xf]  ;;  %v719_v10 = vld [vmem:[%s989_s5 + $0x8] sm:$0xf0]  ;;  %v718_v11 = vld [vmem:[%s989_s5 + $0x4] sm:$0xf] }
  0x1e   : > { %519 = vmatpush.bf16.msra.mxu2 %v675_v44  ;;  %533 = vmatpush.bf16.msra.mxu3 %v679_v45  ;;  %v623_v12 = vor.u32 %v719_v10, %v622_v9  ;;  %v624_v13 = vld [vmem:[%s989_s5 + $0xc] sm:$0xf0]  ;;  %v630_v14 = vld [vmem:[%s989_s5 + $0x8] sm:$0xf]  ;;  %v720_v15 = vld [vmem:[%s989_s5 + $0x10] sm:$0xf0] }
  0x1f   : > { %v627_v16 = vor.u32 %v718_v11, %v624_v13  ;;  %v631_v17 = vor.u32 %v720_v15, %v630_v14  ;;  %v751_v19 = vld [vmem:[%s988_s4] ss:$0 sm:$0xff] }
  0x20   : > { %v366_v29 = vld [vmem:[%s990_s6] sm:$0x7] }
  0x21   : > { %506 = vmatpush.bf16.msra.mxu1 %v659_v49  ;;  %v368_v31 = vperm.slane %v366_v29, 0  ;;  %v369_v32 = vperm.slane %v366_v29, 1  ;;  %v370_v33 = vperm.slane %v366_v29, 2 }
  0x22   : > { %520 = vmatpush.bf16.msra.mxu2 %v663_v53  ;;  %534 = vmatpush.bf16.msra.mxu3 %v667_v54 }
  0x25   : > { %507 = vmatpush.bf16.msra.mxu1 %v647_v58 }
  0x26   : > { %521 = vmatpush.bf16.msra.mxu2 %v651_v62  ;;  %535 = vmatpush.bf16.msra.mxu3 %v655_v63 }
  0x29   : > { %508 = vmatpush.bf16.msra.mxu1 %v635_v3 }
  0x2a   : > { %522 = vmatpush.bf16.msra.mxu2 %v639_v7  ;;  %536 = vmatpush.bf16.msra.mxu3 %v643_v8 }
  0x2d   : > { %509 = vmatpush.bf16.msra.mxu1 %v623_v12 }
  0x2e   : > { %523 = vmatpush.bf16.msra.mxu2 %v627_v16  ;;  %537 = vmatpush.bf16.msra.mxu3 %v631_v17 }
  0x96   : > { %v321_v18 = vpop.f32.mrf.mxu0 }
  0x97   : > { %v322_v20 = vadd.f32 %v751_v19, %v321_v18 }
  0x99   : > { %v329_v23 = vmul.f32 %v328_v21, %v322_v20  ;;  %vm326_vm4 = vcmp.ge.f32.partialorder %v322_v20, 0.0 }
  0x9b   : > { %v331_v26 = vsel %vm326_vm4, %v322_v20, %v329_v23 }
  0x9e   : > { %v323_v22 = vpop.f32.mrf.mxu0 }
  0x9f   : > { %v324_v24 = vadd.f32 %v751_v19, %v323_v22 }
  0xa1   : > { %vm327_vm5 = vcmp.ge.f32.partialorder %v324_v24, 0.0  ;;  %v330_v25 = vmul.f32 %v328_v21, %v324_v24 }
  0xa3   : > { %v332_v27 = vsel %vm327_vm5, %v324_v24, %v330_v25 }
  0xa4   : > { %v333_v28 = vpack.c.bf16 %v332_v27, %v331_v26 }
  0xa6   : > { %510 = vmatmul.bf16.vlgmr.msra.gmra.mxu1 %v333_v28  ;;  %524 = vmatmul.bf16.vlgmr.msra.gmra.mxu2 %v333_v28 }
  0xa7   : > { %538 = vmatmul.bf16.vlgmr.msra.gmra.mxu3 %v333_v28 }
 0x123   : > { %v511_v30 = vpop.f32.mrf.mxu1 }
 0x124   : > { %v512_v35 = vadd.f32 %v511_v30, %v368_v31 }
 0x129   : > { %v525_v34 = vpop.f32.mrf.mxu2 }
 0x12a   : > { %v526_v36 = vadd.f32 %v525_v34, %v369_v32  ;;  %v539_v37 = vpop.f32.mrf.mxu3 }
 0x12b   : > { %v540_v38 = vadd.f32 %v539_v37, %v370_v33  ;;  %v513_v41 = vpop.f32.mrf.mxu1 }
 0x12c   : > { %v544_v39 = vpack.c.bf16 %v526_v36, %v512_v35  ;;  %v514_v43 = vadd.f32 %v513_v41, %v368_v31 }
 0x12d   : > { %v545_v40 = vpack.c.bf16 %v540_v38, %v540_v38 }
 0x12e   : > { %548 = vst [vmem:[%s284_s25] sm:$0xff] %v544_v39 }
 0x12f   : > { %549 = vst [vmem:[%s284_s25 + $0x8] sm:$0xf] %v545_v40 }
 0x131   : > { %v527_v42 = vpop.f32.mrf.mxu2 }
 0x132   : > { %v528_v44 = vadd.f32 %v527_v42, %v369_v32  ;;  %v541_v45 = vpop.f32.mrf.mxu3 }
 0x133   : > { %v542_v46 = vadd.f32 %v541_v45, %v370_v33 }
 0x134   : > { %v546_v47 = vpack.c.bf16 %v528_v44, %v514_v43 }
 0x135   : > { %v547_v48 = vpack.c.bf16 %v542_v46, %v542_v46 }
 0x136   : > { %550 = vst [vmem:[%s284_s25 + $0xc] sm:$0xff] %v546_v47 }
 0x137   : > { %551 = vst [vmem:[%s284_s25 + $0x14] sm:$0xf] %v547_v48 }
 0x138 PF: > { %s19_s28 = sadd.s32 1, %s758_s28  }
 0x139   : > { %p16_p4 = scmp.ge.s32.totalorder %s19_s28, 4  }
 0x13b   :  { %18 = sbr.rel (!%p16_p4) target bundleno = 3 (0x3), region = 78 }

// kernel: voice_in_forward.3
= control target key start
LH: loop header
LB: loop body
LE: loop exit
PB: predicated region body
PF: predicated region fallthrough
CT: control target
= control target key end

     0   :  { %s882_s0 = inlined_call_operand.<no memory space> [shape: f32[1], index: 0, kind: input, shape index: {}]   ;;  %s883_s1 = inlined_call_operand.vmem [shape: bf16[8,4,384], index: 1, kind: input, shape index: {}]   ;;  %s884_s2 = inlined_call_operand.vmem [shape: bf16[128,384], index: 2, kind: input, shape index: {}]   ;;  %s885_s3 = inlined_call_operand.vmem [shape: f32[1,128], index: 3, kind: input, shape index: {}]   ;;  %s886_s4 = inlined_call_operand.vmem [shape: bf16[128,128], index: 4, kind: input, shape index: {}]   ;;  %s887_s5 = inlined_call_operand.vmem [shape: f32[1,128], index: 5, kind: input, shape index: {}]   ;;  %s888_s6 = inlined_call_operand.hbm [shape: f32[4,128], index: 6, kind: output, shape index: {}]  }
   0x1   :  { %11 = sst [smem:[#allocation2]] %s882_s0 }
   0x2   :  { %12 = vsyncpa [#allocation4], 0  ;;  %v683_v0 = vld [vmem:[%s885_s3] sm:$0x1]  ;;  %v685_v1 = vmov 0.0   ;;  %s687_s25 = smov 0  }
   0x3 LB: > { %v494_v2 = vld [vmem:[%s884_s2 + $0xa8] sm:$0xf]  ;;  %v561_v3 = vld [vmem:[%s884_s2 + $0xb0] sm:$0xf0]  ;;  %v560_v4 = vld [vmem:[%s884_s2 + $0xac] sm:$0xf]  ;;  %s639_s25 = sphi %s687_s25, %s31_s25   ;;  %v635_v1 = vphi %v685_v1, %v889_v1  }
   0x4   : > { %v495_v5 = vor.u32 %v561_v3, %v494_v2  ;;  %v496_v6 = vld [vmem:[%s884_s2 + $0xb4] sm:$0xf0]  ;;  %v482_v7 = vld [vmem:[%s884_s2 + $0x90] sm:$0xf]  ;;  %v558_v8 = vld [vmem:[%s884_s2 + $0x98] sm:$0xf0] }
   0x5   : > { %v499_v9 = vor.u32 %v560_v4, %v496_v6  ;;  %v557_v10 = vld [vmem:[%s884_s2 + $0x94] sm:$0xf]  ;;  %v484_v11 = vld [vmem:[%s884_s2 + $0x9c] sm:$0xf0]  ;;  %v483_v12 = vor.u32 %v558_v8, %v482_v7  ;;  %v470_v14 = vld [vmem:[%s884_s2 + $0x78] sm:$0xf] }
   0x6   : > { %200 = vmatpush.bf16.msra.mxu0 %v495_v5  ;;  %v487_v13 = vor.u32 %v557_v10, %v484_v11  ;;  %v555_v15 = vld [vmem:[%s884_s2 + $0x80] sm:$0xf0]  ;;  %v554_v16 = vld [vmem:[%s884_s2 + $0x7c] sm:$0xf]  ;;  %v472_v17 = vld [vmem:[%s884_s2 + $0x84] sm:$0xf0]  ;;  %v39_v11 = vpack.c.bf16 %v635_v1, %v635_v1 }
   0x7   : > { %213 = vmatpush.bf16.msra.mxu1 %v499_v9  ;;  %v502_v18 = vld [vmem:[%s884_s2 + $0xb0] sm:$0xf]  ;;  %v562_v19 = vld [vmem:[%s884_s2 + $0xb8] sm:$0xf0]  ;;  %v471_v21 = vor.u32 %v555_v15, %v470_v14  ;;  %v490_v22 = vld [vmem:[%s884_s2 + $0x98] sm:$0xf]  ;;  %v475_v24 = vor.u32 %v554_v16, %v472_v17 }
   0x8   : > { %v503_v20 = vor.u32 %v562_v19, %v502_v18  ;;  %v559_v23 = vld [vmem:[%s884_s2 + $0xa0] sm:$0xf0]  ;;  %v458_v25 = vld [vmem:[%s884_s2 + $0x60] sm:$0xf]  ;;  %v552_v26 = vld [vmem:[%s884_s2 + $0x68] sm:$0xf0] }
   0x9   : > { %v551_v27 = vld [vmem:[%s884_s2 + $0x64] sm:$0xf]  ;;  %v491_v28 = vor.u32 %v559_v23, %v490_v22  ;;  %v460_v29 = vld [vmem:[%s884_s2 + $0x6c] sm:$0xf0]  ;;  %v478_v30 = vld [vmem:[%s884_s2 + $0x80] sm:$0xf]  ;;  %v459_v32 = vor.u32 %v552_v26, %v458_v25 }
   0xa   : > { %201 = vmatpush.bf16.msra.mxu0 %v483_v12  ;;  %226 = vmatpush.bf16.msra.mxu2 %v503_v20  ;;  %v556_v31 = vld [vmem:[%s884_s2 + $0x88] sm:$0xf0]  ;;  %v463_v33 = vor.u32 %v551_v27, %v460_v29  ;;  %v446_v34 = vld [vmem:[%s884_s2 + $0x48] sm:$0xf]  ;;  %v549_v35 = vld [vmem:[%s884_s2 + $0x50] sm:$0xf0] }
   0xb   : > { %214 = vmatpush.bf16.msra.mxu1 %v487_v13  ;;  %v548_v36 = vld [vmem:[%s884_s2 + $0x4c] sm:$0xf]  ;;  %v479_v37 = vor.u32 %v556_v31, %v478_v30  ;;  %v448_v38 = vld [vmem:[%s884_s2 + $0x54] sm:$0xf0]  ;;  %v466_v39 = vld [vmem:[%s884_s2 + $0x68] sm:$0xf]  ;;  %v447_v41 = vor.u32 %v549_v35, %v446_v34 }
   0xc   : > { %v553_v40 = vld [vmem:[%s884_s2 + $0x70] sm:$0xf0]  ;;  %v451_v42 = vor.u32 %v548_v36, %v448_v38  ;;  %v434_v43 = vld [vmem:[%s884_s2 + $0x30] sm:$0xf]  ;;  %v546_v44 = vld [vmem:[%s884_s2 + $0x38] sm:$0xf0] }
   0xd   : > { %v545_v45 = vld [vmem:[%s884_s2 + $0x34] sm:$0xf]  ;;  %v467_v46 = vor.u32 %v553_v40, %v466_v39  ;;  %v436_v47 = vld [vmem:[%s884_s2 + $0x3c] sm:$0xf0]  ;;  %v454_v48 = vld [vmem:[%s884_s2 + $0x50] sm:$0xf]  ;;  %v435_v50 = vor.u32 %v546_v44, %v434_v43 }
   0xe   : > { %202 = vmatpush.bf16.msra.mxu0 %v471_v21  ;;  %227 = vmatpush.bf16.msra.mxu2 %v491_v28  ;;  %v550_v49 = vld [vmem:[%s884_s2 + $0x58] sm:$0xf0]  ;;  %v439_v51 = vor.u32 %v545_v45, %v436_v47  ;;  %v422_v52 = vld [vmem:[%s884_s2 + $0x18] sm:$0xf]  ;;  %v543_v53 = vld [vmem:[%s884_s2 + $0x20] sm:$0xf0] }
   0xf   : > { %215 = vmatpush.bf16.msra.mxu1 %v475_v24  ;;  %v542_v54 = vld [vmem:[%s884_s2 + $0x1c] sm:$0xf]  ;;  %v455_v55 = vor.u32 %v550_v49, %v454_v48  ;;  %v424_v56 = vld [vmem:[%s884_s2 + $0x24] sm:$0xf0]  ;;  %v442_v57 = vld [vmem:[%s884_s2 + $0x38] sm:$0xf]  ;;  %v423_v59 = vor.u32 %v543_v53, %v422_v52 }
  0x10   : > { %v547_v58 = vld [vmem:[%s884_s2 + $0x40] sm:$0xf0]  ;;  %v427_v60 = vor.u32 %v542_v54, %v424_v56  ;;  %v410_v61 = vld [vmem:[%s884_s2] sm:$0xf]  ;;  %v540_v62 = vld [vmem:[%s884_s2 + $0x8] sm:$0xf0] }
  0x11   : > { %v539_v63 = vld [vmem:[%s884_s2 + $0x4] sm:$0xf]  ;;  %v443_v2 = vor.u32 %v547_v58, %v442_v57  ;;  %v412_v3 = vld [vmem:[%s884_s2 + $0xc] sm:$0xf0]  ;;  %v430_v4 = vld [vmem:[%s884_s2 + $0x20] sm:$0xf]  ;;  %v411_v6 = vor.u32 %v540_v62, %v410_v61 }
  0x12   : > { %203 = vmatpush.bf16.msra.mxu0 %v459_v32  ;;  %228 = vmatpush.bf16.msra.mxu2 %v479_v37  ;;  %v544_v5 = vld [vmem:[%s884_s2 + $0x28] sm:$0xf0]  ;;  %v415_v7 = vor.u32 %v539_v63, %v412_v3  ;;  %v418_v9 = vld [vmem:[%s884_s2 + $0x8] sm:$0xf]  ;;  %v541_v10 = vld [vmem:[%s884_s2 + $0x10] sm:$0xf0] }
  0x13   : > { %216 = vmatpush.bf16.msra.mxu1 %v463_v33  ;;  %v431_v8 = vor.u32 %v544_v5, %v430_v4  ;;  %v419_v12 = vor.u32 %v541_v10, %v418_v9  ;;  %s538_s21 = smul.u32 6, %s639_s25  ;;  %v283_v35 = vperm.slane %v683_v0, 0  ;;  %s31_s25 = sadd.s32 1, %s639_s25  }
  0x14   : > { %p28_p0 = scmp.ge.s32.totalorder %s31_s25, 8  }
  0x15   : > { %s35_s24 = scalar_lea.vmem %s883_s1, %s538_s21  ;;  %v569_v61 = vld [vmem:[%s886_s4 + $0x30] sm:$0xff] (%p28_p0)  ;;  %v567_v62 = vld [vmem:[%s886_s4 + $0x20] sm:$0xff] (%p28_p0)  ;;  %s293_s25 = sld [smem:[#allocation2]] (%p28_p0)  ;;  %v566_v0 = vld [vmem:[%s886_s4 + $0x18] sm:$0xff] (%p28_p0) }
  0x16   : > { %204 = vmatpush.bf16.msra.mxu0 %v447_v41  ;;  %229 = vmatpush.bf16.msra.mxu2 %v467_v46  ;;  %v36_v13 = vld [vmem:[%s35_s24] sm:$0x3f]  ;;  %v565_v63 = vld [vmem:[%s886_s4 + $0x10] sm:$0xff] (%p28_p0)  ;;  %v564_v3 = vld [vmem:[%s886_s4 + $0x8] sm:$0xff] (%p28_p0)  ;;  %s641_s16 = smov (%p28_p0), [#allocation3]   ;;  %s388_s20 = sshll.u32 (%p28_p0), %s888_s6, 4  ;;  %s389_s20 = int_to_ptr.hbm [resolvable:$true] %s388_s20 }
  0x17   : > { %217 = vmatpush.bf16.msra.mxu1 %v451_v42  ;;  %v37_v14 = vunpack.c.l.bf16 %v36_v13  ;;  %v38_v44 = vunpack.c.h.bf16 %v36_v13  ;;  %v563_v5 = vld [vmem:[%s886_s4] sm:$0xff] (%p28_p0)  ;;  %s386_s17 = sshll.u32 (%p28_p0), %s641_s16, 4  ;;  %s387_s17 = int_to_ptr.vmem [resolvable:$true] %s386_s17 }
  0x19   : > { %v260_v15 = vrot.slane %v37_v14, 4 }
  0x1a   : > { %205 = vmatpush.bf16.msra.mxu0 %v435_v50  ;;  %230 = vmatpush.bf16.msra.mxu2 %v455_v55 }
  0x1b   : > { %218 = vmatpush.bf16.msra.mxu1 %v439_v51 }
  0x1e   : > { %206 = vmatpush.bf16.msra.mxu0 %v423_v59  ;;  %231 = vmatpush.bf16.msra.mxu2 %v443_v2  ;;  %v295_v2 = vstv (%p28_p0), %s293_s25 }
  0x1f   : > { %219 = vmatpush.bf16.msra.mxu1 %v427_v60  ;;  %v570_v60 = vld [vmem:[%s886_s4 + $0x38] sm:$0xff] (%p28_p0) }
  0x22   : > { %207 = vmatpush.bf16.msra.mxu0 %v411_v6  ;;  %232 = vmatpush.bf16.msra.mxu2 %v431_v8  ;;  %v598_v8 = vld [vmem:[%s887_s5] ss:$0 sm:$0xff] (%p28_p0) }
  0x23   : > { %220 = vmatpush.bf16.msra.mxu1 %v415_v7 }
  0x25   : > { %208 = vmatmul.bf16.vlgmr.msra.gmra.mxu0 %v39_v11 }
  0x26   : > { %221 = vmatmul.bf16.vlgmr.msra.gmra.mxu1 %v39_v11  ;;  %233 = vmatpush.bf16.msra.mxu2 %v419_v12 }
  0x27   :  { %367 = vmatpush.bf16.msra.mxu0 (%p28_p0), %v570_v60 }
  0x29   : > { %234 = vmatmul.bf16.vlgmr.msra.gmra.mxu2 %v39_v11 }
  0x2b   :  { %368 = vmatpush.bf16.msra.mxu0 (%p28_p0), %v569_v61 }
  0xa2   : > { %v209_v16 = vpop.f32.mrf.mxu0 }
  0xa3   : > { %v239_v17 = vadd.f32 %v209_v16, %v37_v14  ;;  %v222_v18 = vpop.f32.mrf.mxu1 }
  0xa4   : > { %v262_v19 = vadd.f32 %v260_v15, %v222_v18 }
  0xa5   : > { %v504_v20 = vmul.f32 -1.442695, %v239_v17 }
  0xa6   : > { %v505_v21 = vmul.f32 -1.442695, %v262_v19 }
  0xa7   : > { %588 = vpow2.f32 %v504_v20 }
  0xa8   : > { %590 = vpow2.f32 %v505_v21 }
  0xaa   : > { %v211_v22 = vpop.f32.mrf.mxu0 }
  0xab   : > { %v224_v23 = vpop.f32.mrf.mxu1 }
  0xac   : > { %v235_v25 = vpop.f32.mrf.mxu2 }
  0xad   : > { %v589_v24 = vpop.eup %588  ;;  %v285_v42 = vadd.f32 %v283_v35, %v235_v25 }
  0xae   : > { %v591_v26 = vpop.eup %590  ;;  %v243_v27 = vadd.f32 1.0, %v589_v24 }
  0xaf   : > { %v266_v28 = vadd.f32 1.0, %v591_v26 }
  0xb0   : > { %592 = vrcp.f32 %v243_v27  ;;  %v255_v37 = vand.u32 2147483648, %v243_v27  ;;  %v253_v39 = vand.u32 2147483647, %v243_v27  ;;  %vm249_vm1 = vweird.f32 %v243_v27 }
  0xb1   : > { %594 = vrcp.f32 %v266_v28  ;;  %vm272_vm4 = vweird.f32 %v266_v28  ;;  %v278_v48 = vand.u32 2147483648, %v266_v28  ;;  %v276_v50 = vand.u32 2147483647, %v266_v28 }
  0xb2   : > { %v256_v43 = vor.u32 1.1754944e-38, %v255_v37  ;;  %vm254_vm3 = vcmp.eq.f32.partialorder %v253_v39, 8.507059e+37 }
  0xb3   : > { %v279_v53 = vor.u32 1.1754944e-38, %v278_v48  ;;  %vm277_vm7 = vcmp.eq.f32.partialorder %v276_v50, 8.507059e+37 }
  0xb4   : > { %v237_v29 = vpop.f32.mrf.mxu2 }
  0xb6   : > { %v593_v30 = vpop.eup %592 }
  0xb7   : > { %v595_v31 = vpop.eup %594  ;;  %v245_v32 = vmul.f32 %v593_v30, %v243_v27  ;;  %vm250_vm0 = vweird.f32 %v593_v30 }
  0xb8   : > { %v268_v33 = vmul.f32 %v595_v31, %v266_v28  ;;  %vm251_vm2 = vmor %vm249_vm1, %vm250_vm0  ;;  %vm273_vm5 = vweird.f32 %v595_v31 }
  0xb9   : > { %v246_v34 = vsub.f32 1.0, %v245_v32  ;;  %vm274_vm6 = vmor %vm272_vm4, %vm273_vm5 }
  0xba   : > { %v269_v36 = vsub.f32 1.0, %v268_v33 }
  0xbb   : > { %v247_v38 = vmul.f32 %v593_v30, %v246_v34 }
  0xbc   : > { %v270_v40 = vmul.f32 %v595_v31, %v269_v36 }
  0xbd   : > { %v248_v41 = vadd.f32 %v593_v30, %v247_v38 }
  0xbe   : > { %v271_v46 = vadd.f32 %v595_v31, %v270_v40 }
  0xbf   : > { %v252_v45 = vsel %vm251_vm2, %v593_v30, %v248_v41 }
  0xc0   : > { %v257_v47 = vsel %vm254_vm3, %v256_v43, %v252_v45  ;;  %v275_v52 = vsel %vm274_vm6, %v595_v31, %v271_v46 }
  0xc1   : > { %v286_v49 = vmul.f32 %v285_v42, %v257_v47  ;;  %v280_v54 = vsel %vm277_vm7, %v279_v53, %v275_v52 }
  0xc2   : > { %v289_v55 = vsub.f32 1.0, %v280_v54  ;;  %v291_v58 = vmul.f32 %v635_v1, %v280_v54 }
  0xc3   : > { %v287_v51 = vadd.f32 %v286_v49, %v38_v44 }
  0xc5   : > { %596 = vtanh.f32 %v287_v51 }
  0xcb   : > { %v597_v56 = vpop.eup %596 }
  0xcc   : > { %v290_v57 = vmul.f32 %v597_v56, %v289_v55  ;;  %30 = sbr.rel (!%p28_p0) target bundleno = 3 (0x3), region = 52 }
  0xce   : > { %v292_v59 = vadd.f32 %v291_v58, %v290_v57  }
  0xd0   : > { %v889_v1 = vmov %v292_v59  ;;  %v296_v4 = vmul.f32 (%p28_p0), %v295_v2, %v292_v59  ;;  %vm294_vm8 = vcmp.ge.f32.partialorder (%p28_p0), %v292_v59, 0.0 }
  0xd1   :  { %v568_v1 = vld [vmem:[%s886_s4 + $0x28] sm:$0xff] }
  0xd2   :  { %369 = vmatpush.bf16.msra.mxu0 %v568_v1  ;;  %v297_v6 = vsel %vm294_vm8, %v292_v59, %v296_v4 }
  0xd3   :  { %v298_v7 = vpack.c.bf16 %v297_v6, %v297_v6 }
  0xd6   :  { %370 = vmatpush.bf16.msra.mxu0 %v567_v62 }
  0xda   :  { %371 = vmatpush.bf16.msra.mxu0 %v566_v0 }
  0xde   :  { %372 = vmatpush.bf16.msra.mxu0 %v565_v63 }
  0xe2   :  { %373 = vmatpush.bf16.msra.mxu0 %v564_v3 }
  0xe6   :  { %374 = vmatpush.bf16.msra.mxu0 %v563_v5 }
  0xe9   :  { %375 = vmatmul.bf16.vlgmr.msra.gmra.mxu0 %v298_v7 }
 0x166   :  { %v376_v9 = vpop.f32.mrf.mxu0 }
 0x167   :  { %v377_v10 = vadd.f32 %v598_v8, %v376_v9 }
 0x169   :  { %380 = vst [vmem:[#allocation3] sm:$0xf] %v377_v10 }
 0x16a   :  { %391 = dma.vmem_to_hbm [thread:$0]  %s387_s17, 64, %s389_s20, [#allocation4]  }
 0x16e   :  { %v378_v11 = vpop.f32.mrf.mxu0 }
 0x16f   :  { %631 = dma.done.wait [#allocation4], 64  }
 0x170   :  { %632 = vsyncadd [#allocation4], 4294967232 }
 0x171   :  { %396 = vsyncpa [#allocation4], 1 }

</bundles_post_ra>
